<compile_context>
chip_gen: v7x
topology: tpu7x:2x2x1
jax: 0.10.0
libtpu: 0.0.40
codegen_flags: <defaults>
</compile_context>

<pallas_src>
import functools

import jax
import jax.numpy as jnp
from jax import lax
from jax.experimental import pallas as pl
from jax.experimental.pallas import tpu as pltpu

_SQRT_HALF = 0.7071067811865476  # 1/sqrt(2): constant multiply, no per-element divide


def classifier_kernel(x_ref, w1_ref, b1_ref, gw2_ref, c_ref, o_ref, *, gelu_dtype=None):
    # --- Linear(H -> 2H) on the MXU. Inputs may be bf16 (fast path on every gen); f32 acc.
    h = jnp.dot(x_ref[...], w1_ref[...], preferred_element_type=jnp.float32)
    h = h + b1_ref[...]                                        # [tile_b, 2H] f32

    # --- GELU (exact, erf-based — matches the BERT-style GELU module).
    if gelu_dtype is None:
        cdf = 0.5 * (1.0 + lax.erf(h * _SQRT_HALF))
    else:
        # Optional v6e/v7x knob: erf polynomial in bf16 (VALU is the binding slot once the
        # GEMM is bf16). Keeps the final h * cdf multiply in f32. Slightly changes numerics.
        cdf = (0.5 * (1.0 + lax.erf(h.astype(gelu_dtype) * _SQRT_HALF))).astype(jnp.float32)
    h = h * cdf

    # --- LayerNorm stats (eps=1e-12, biased variance, centered form for torch parity) fused
    #     with the 2H -> 1 projection:  out = inv_std * sum(cen * (gamma*w2)) + (sum(beta*w2)+b2)
    mean = jnp.mean(h, axis=-1, keepdims=True)                 # [tile_b, 1]
    cen = h - mean                                             # [tile_b, 2H]
    var = jnp.mean(cen * cen, axis=-1)                         # [tile_b]
    red = jnp.sum(cen * gw2_ref[...], axis=-1)                 # [tile_b]  VPU mul + XLU reduce
    out = lax.rsqrt(var + 1e-12) * red + c_ref[0, 0]           # [tile_b]

    # Lane-dense store: one [1, tile_b] row per grid step (batch along lanes).
    o_ref[...] = out.reshape(1, -1).astype(o_ref.dtype)


def _round_up(n, m):
    return ((n + m - 1) // m) * m


def simple_classifier(x, params, *, tile_b=None, gemm_dtype=None, gelu_dtype=None):
    """x: [B, H]. params: dict (see init_params). Returns [B, 1] float32.

    gemm_dtype: cast x and w1 (first-GEMM inputs only) to e.g. jnp.bfloat16 — recommended on
      every TPU generation (the MXU is bf16-native even on v5e); accumulation and all
      post-GEMM math stay f32. To skip the wrapper-side cast (an extra HBM pass per call),
      pass x / params["w1"] already in bf16. Accuracy loss grows ~sqrt(H); loosen tolerances.
    gelu_dtype: optionally evaluate the erf chain in bf16 (worthwhile on v6e/v7x only);
      default None keeps exact f32 parity with the PyTorch reference.
    """
    B, H = x.shape
    H2 = 2 * H
    w1, b1 = params["w1"], params["b1"]

    # Fuse LayerNorm affine + final projection (wrapper-side, tiny one-time cost).
    gw2 = (params["gamma"] * params["w2"]).astype(jnp.float32).reshape(1, H2)
    c = (jnp.sum(params["beta"] * params["w2"]) + params["b2"][0, 0]).astype(jnp.float32)
    c = c.reshape(1, 1)

    if gemm_dtype is not None:
        gemm_dtype = jnp.dtype(gemm_dtype)
        if x.dtype != gemm_dtype:
            x = x.astype(gemm_dtype)
        if w1.dtype != gemm_dtype:
            w1 = w1.astype(gemm_dtype)
    b1 = b1.astype(jnp.float32).reshape(1, H2)

    # Batch tile: whole batch if B <= 16; otherwise guarantee >= 2 grid steps so the
    # "parallel" axis shards across both v7x TensorCores, capped at 256 rows to stay inside
    # v7x's 64 MiB VMEM. (On 128 MiB parts — v5e/v6e — sweeping tile_b up to 512 is
    # reasonable once the weights are single-buffered; keep it a multiple of 16 for bf16 x.)
    if tile_b is None:
        tile_b = B if B <= 16 else min(256, _round_up(pl.cdiv(B, 2), 16))
    nb = pl.cdiv(B, tile_b)

    resident = lambda i: (0, 0)             # constant index_map: DMA'd once, VMEM-resident
    single = pl.Buffered(buffer_count=1)    # no second pipeline buffer for constant blocks

    x_item = jnp.dtype(x.dtype).itemsize
    w1_item = jnp.dtype(w1.dtype).itemsize

    # Explicit scoped-VMEM budget: resident w1 (single-buffered) + double-buffered x / out
    # tiles + headroom for f32 activation temporaries; capped at the chip's VMEM capacity.
    needed = (
        H * H2 * w1_item            # w1 (single-buffered)
        + 2 * H2 * 4                # b1 + gamma*w2 rows
        + 2 * tile_b * H * x_item   # x tile, double-buffered
        + 2 * tile_b * 4            # output row, double-buffered
        + 6 * tile_b * H2 * 4       # h / cen / temporaries + spill slack
    )
    try:
        vmem_cap = int(pltpu.get_tpu_info().vmem_capacity_bytes)
    except Exception:
        vmem_cap = 64 << 20         # v7x per-TC capacity: safe lower bound
    vmem_limit = int(min(max(2 * needed, 32 << 20), vmem_cap))

    cost = pl.CostEstimate(
        flops=2 * B * H * H2 + 12 * B * H2,   # GEMM1 + GELU/LN/fused-projection elementwise
        transcendentals=B * H2,               # erf per element of the [B, 2H] activation
        bytes_accessed=B * H * x_item + H * H2 * w1_item + 2 * H2 * 4 + 4 + B * 4,
    )

    kernel = functools.partial(classifier_kernel, gelu_dtype=gelu_dtype)

    out = pl.pallas_call(
        kernel,
        out_shape=jax.ShapeDtypeStruct((nb, tile_b), jnp.float32),
        grid=(nb,),
        in_specs=[
            pl.BlockSpec((tile_b, H), lambda i: (i, 0)),              # x: streamed/pipelined
            pl.BlockSpec((H, H2), resident, pipeline_mode=single),    # w1 (resident)
            pl.BlockSpec((1, H2), resident, pipeline_mode=single),    # b1 (resident)
            pl.BlockSpec((1, H2), resident, pipeline_mode=single),    # gamma*w2 (resident)
            pl.BlockSpec(memory_space=pltpu.SMEM),                    # c scalar: SMEM
        ],
        out_specs=pl.BlockSpec((1, tile_b), lambda i: (i, 0)),        # lane-dense rows
        compiler_params=pltpu.CompilerParams(
            dimension_semantics=("parallel",),  # pays off on v7x (2 TCs); harmless elsewhere
            vmem_limit_bytes=vmem_limit,
        ),
        cost_estimate=cost,
    )(x, w1, b1, gw2, c)

    # [nb, tile_b] lane-dense rows -> [B, 1]. Padded rows of a partial last tile (if any)
    # hold garbage from the padded block and are sliced off here; valid rows are unaffected
    # because every batch row is computed independently.
    return out.reshape(-1)[:B].reshape(B, 1)


def init_params(key, hidden_size, initializer_range=0.02):
    """Matches SimpleClassifier.init_weights: Linear weights ~ N(0, initializer_range),
    biases = 0; LayerNorm gamma = 1, beta = 0. w2 kept as a [1, 2H] row (PyTorch [out, in])."""
    k1, k2 = jax.random.split(key)
    H = hidden_size
    w1 = jax.random.normal(k1, (H, 2 * H), jnp.float32) * initializer_range
    b1 = jnp.zeros((1, 2 * H), jnp.float32)
    gamma = jnp.ones((1, 2 * H), jnp.float32)
    beta = jnp.zeros((1, 2 * H), jnp.float32)
    w2 = jax.random.normal(k2, (1, 2 * H), jnp.float32) * initializer_range
    b2 = jnp.zeros((1, 1), jnp.float32)
    return dict(w1=w1, b1=b1, gamma=gamma, beta=beta, w2=w2, b2=b2)


def reference(x, p):
    """Pure-JAX reference, written in the *unfused* form of the PyTorch module."""
    h = x @ p["w1"] + p["b1"]
    h = h * 0.5 * (1.0 + lax.erf(h / jnp.sqrt(2.0)))
    mean = jnp.mean(h, axis=-1, keepdims=True)
    var = jnp.mean((h - mean) ** 2, axis=-1, keepdims=True)
    hn = (h - mean) * lax.rsqrt(var + 1e-12)
    hn = hn * p["gamma"] + p["beta"]
    return hn @ p["w2"].T + p["b2"]


if __name__ == "__main__":
    hidden_size = 32
    batch = 8

    key = jax.random.PRNGKey(0)
    kx, kp = jax.random.split(key)
    x = jax.random.normal(kx, (batch, hidden_size), jnp.float32)
    params = init_params(kp, hidden_size, initializer_range=0.02)
    ref = reference(x, params)

    # f32 GEMM path: exact parity with the PyTorch/f32 reference (validates the fusion).
    out = jax.block_until_ready(simple_classifier(x, params))
    assert out.shape == (batch, 1)
    assert jnp.allclose(out, ref, atol=1e-5, rtol=1e-5), (out, ref)

    # bf16 GEMM-input fast path (recommended on v5e/v6e/v7x): loosened tolerance.
    out_bf16 = jax.block_until_ready(simple_classifier(x, params, gemm_dtype=jnp.bfloat16))
    assert out_bf16.shape == (batch, 1)
    assert jnp.allclose(out_bf16, ref, atol=5e-2, rtol=5e-2), (out_bf16, ref)

    # Multi-tile grid: B > 16 -> >= 2 "parallel" steps (v7x megacore path), exercising the
    # partial last tile and the lane-dense [num_tiles, tile_b] output writeback.
    batch2 = 48
    x2 = jax.random.normal(jax.random.PRNGKey(1), (batch2, hidden_size), jnp.float32)
    ref2 = reference(x2, params)
    out2 = jax.block_until_ready(simple_classifier(x2, params))
    assert out2.shape == (batch2, 1)
    assert jnp.allclose(out2, ref2, atol=1e-5, rtol=1e-5), (out2, ref2)

    print("KERNEL_OK")
</pallas_src>

<mosaic_0001>
module attributes {stable_mosaic.version = 11 : i64} {
  func.func @classifier_kernel(%arg0: i32, %arg1: memref<8x32xf32, #tpu.memory_space<vmem>>, %arg2: memref<32x64xf32, #tpu.memory_space<vmem>>, %arg3: memref<1x64xf32, #tpu.memory_space<vmem>>, %arg4: memref<1x64xf32, #tpu.memory_space<vmem>>, %arg5: memref<1x1xf32, #tpu.memory_space<smem>>, %arg6: memref<1x8xf32, #tpu.memory_space<vmem>>) attributes {dimension_semantics = [#tpu.dimension_semantics<parallel>], iteration_bounds = array<i64: 1>, scalar_prefetch = 0 : i64, scratch_operands = 0 : i64, tpu.core_type = #tpu.core_type<tc>, window_params = [{transform_indices = @transform_0, window_bounds = array<i64: 8, 32>}, {pipeline_mode = #tpu.pipeline_mode<synchronous>, transform_indices = @transform_1, window_bounds = array<i64: 32, 64>}, {pipeline_mode = #tpu.pipeline_mode<synchronous>, transform_indices = @transform_2, window_bounds = array<i64: 1, 64>}, {pipeline_mode = #tpu.pipeline_mode<synchronous>, transform_indices = @transform_3, window_bounds = array<i64: 1, 64>}, {transform_indices = @transform_4, window_bounds = array<i64: 1, 1>}, {transform_indices = @transform_5, window_bounds = array<i64: 1, 8>}]} {
    %c0 = arith.constant 0 : index
    %c0_0 = arith.constant 0 : index
    %0 = vector.load %arg1[%c0, %c0_0] : memref<8x32xf32, #tpu.memory_space<vmem>>, vector<8x32xf32>
    %c0_1 = arith.constant 0 : index
    %c0_2 = arith.constant 0 : index
    %1 = vector.load %arg2[%c0_1, %c0_2] : memref<32x64xf32, #tpu.memory_space<vmem>>, vector<32x64xf32>
    %cst = arith.constant dense<0.000000e+00> : vector<8x64xf32>
    %2 = tpu.matmul %0, %1, %cst {dimension_numbers = #tpu.dot_dimension_numbers<[1], [0], [0], [1], [0, 0, 1, 1], [], []>} : vector<8x32xf32>, vector<32x64xf32>, vector<8x64xf32> -> vector<8x64xf32>
    %c0_3 = arith.constant 0 : index
    %c0_4 = arith.constant 0 : index
    %3 = vector.load %arg3[%c0_3, %c0_4] : memref<1x64xf32, #tpu.memory_space<vmem>>, vector<1x64xf32>
    %4 = vector.broadcast %3 : vector<1x64xf32> to vector<8x64xf32>
    %5 = arith.addf %2, %4 : vector<8x64xf32>
    %cst_5 = arith.constant 0.707106769 : f32
    %6 = vector.broadcast %cst_5 : f32 to vector<8x64xf32>
    %7 = arith.mulf %5, %6 : vector<8x64xf32>
    %8 = math.erf %7 : vector<8x64xf32>
    %cst_6 = arith.constant 1.000000e+00 : f32
    %9 = vector.broadcast %cst_6 : f32 to vector<8x64xf32>
    %10 = arith.addf %9, %8 : vector<8x64xf32>
    %cst_7 = arith.constant 5.000000e-01 : f32
    %11 = vector.broadcast %cst_7 : f32 to vector<8x64xf32>
    %12 = arith.mulf %11, %10 : vector<8x64xf32>
    %13 = arith.mulf %5, %12 : vector<8x64xf32>
    %cst_8 = arith.constant dense<0.000000e+00> : vector<8xf32>
    %14 = vector.multi_reduction <add>, %13, %cst_8 [1] : vector<8x64xf32> to vector<8xf32>
    %15 = vector.shape_cast %14 : vector<8xf32> to vector<8x1xf32>
    %cst_9 = arith.constant 6.400000e+01 : f32
    %16 = vector.broadcast %cst_9 : f32 to vector<8x1xf32>
    %17 = arith.divf %15, %16 : vector<8x1xf32>
    %18 = vector.broadcast %17 : vector<8x1xf32> to vector<8x64xf32>
    %19 = arith.subf %13, %18 : vector<8x64xf32>
    %20 = arith.mulf %19, %19 : vector<8x64xf32>
    %cst_10 = arith.constant dense<0.000000e+00> : vector<8xf32>
    %21 = vector.multi_reduction <add>, %20, %cst_10 [1] : vector<8x64xf32> to vector<8xf32>
    %cst_11 = arith.constant 6.400000e+01 : f32
    %22 = vector.broadcast %cst_11 : f32 to vector<8xf32>
    %23 = arith.divf %21, %22 : vector<8xf32>
    %c0_12 = arith.constant 0 : index
    %c0_13 = arith.constant 0 : index
    %24 = vector.load %arg4[%c0_12, %c0_13] : memref<1x64xf32, #tpu.memory_space<vmem>>, vector<1x64xf32>
    %25 = vector.broadcast %24 : vector<1x64xf32> to vector<8x64xf32>
    %26 = arith.mulf %19, %25 : vector<8x64xf32>
    %cst_14 = arith.constant dense<0.000000e+00> : vector<8xf32>
    %27 = vector.multi_reduction <add>, %26, %cst_14 [1] : vector<8x64xf32> to vector<8xf32>
    %cst_15 = arith.constant 9.99999996E-13 : f32
    %28 = vector.broadcast %cst_15 : f32 to vector<8xf32>
    %29 = arith.addf %23, %28 : vector<8xf32>
    %30 = math.rsqrt %29 : vector<8xf32>
    %31 = arith.mulf %30, %27 : vector<8xf32>
    %c0_16 = arith.constant 0 : index
    %c0_17 = arith.constant 0 : index
    %32 = memref.load %arg5[%c0_16, %c0_17] : memref<1x1xf32, #tpu.memory_space<smem>>
    %33 = vector.broadcast %32 : f32 to vector<8xf32>
    %34 = arith.addf %31, %33 : vector<8xf32>
    %35 = vector.shape_cast %34 : vector<8xf32> to vector<1x8xf32>
    %c0_18 = arith.constant 0 : index
    %c0_19 = arith.constant 0 : index
    %36 = vector.load %arg6[%c0_18, %c0_19] : memref<1x8xf32, #tpu.memory_space<vmem>>, vector<1x8xf32>
    tpu.vector_store %arg6[%c0_18, %c0_19], %35 {strides = array<i32>} : memref<1x8xf32, #tpu.memory_space<vmem>>, vector<1x8xf32>,
    return
  }
  func.func @transform_0(%arg0: i32) -> (i32, i32) {
    %c0_i32 = arith.constant 0 : i32
    %c0_i32_0 = arith.constant 0 : i32
    return %arg0, %c0_i32 : i32, i32
  }
  func.func @transform_1(%arg0: i32) -> (i32, i32) {
    %c0_i32 = arith.constant 0 : i32
    %c0_i32_0 = arith.constant 0 : i32
    %c0_i32_1 = arith.constant 0 : i32
    return %c0_i32, %c0_i32_0 : i32, i32
  }
  func.func @transform_2(%arg0: i32) -> (i32, i32) {
    %c0_i32 = arith.constant 0 : i32
    %c0_i32_0 = arith.constant 0 : i32
    %c0_i32_1 = arith.constant 0 : i32
    return %c0_i32, %c0_i32_0 : i32, i32
  }
  func.func @transform_3(%arg0: i32) -> (i32, i32) {
    %c0_i32 = arith.constant 0 : i32
    %c0_i32_0 = arith.constant 0 : i32
    %c0_i32_1 = arith.constant 0 : i32
    return %c0_i32, %c0_i32_0 : i32, i32
  }
  func.func @transform_4(%arg0: i32) -> (i32, i32) {
    %c0_i32 = arith.constant 0 : i32
    %c0_i32_0 = arith.constant 0 : i32
    %c0_i32_1 = arith.constant 0 : i32
    return %c0_i32, %c0_i32_0 : i32, i32
  }
  func.func @transform_5(%arg0: i32) -> (i32, i32) {
    %c0_i32 = arith.constant 0 : i32
    %c0_i32_0 = arith.constant 0 : i32
    return %arg0, %c0_i32 : i32, i32
  }
}

</mosaic_0001>

<bundles_post_ra>
// kernel: tpu_custom_call.1
= control target key start
LH: loop header
LB: loop body
LE: loop exit
PB: predicated region body
PF: predicated region fallthrough
CT: control target
= control target key end

     0   :  { %11 = vsyncpa [#allocation4], 0  ;;  %s393_s0 = inlined_call_operand.hbm [shape: f32[8,32], index: 0, kind: input, shape index: {}]   ;;  %s394_s1 = inlined_call_operand.hbm [shape: f32[32,64], index: 1, kind: input, shape index: {}]   ;;  %s395_s2 = inlined_call_operand.vmem [shape: f32[1,64], index: 2, kind: input, shape index: {}]   ;;  %s396_s3 = inlined_call_operand.vmem [shape: f32[1,64], index: 3, kind: input, shape index: {}]   ;;  %s397_s4 = inlined_call_operand.<no memory space> [shape: f32[1,1], index: 4, kind: input, shape index: {}]   ;;  %s398_s5 = inlined_call_operand.hbm [shape: f32[1,8], index: 5, kind: output, shape index: {}]  }
   0x1   :  { %12 = vsyncpa [#allocation7], 0 }
   0x2   :  { %13 = vsyncpa [#allocation5], 0  ;;  %s303_s18 = smov [#allocation3]   ;;  %s304_s20 = smov [#allocation6]  }
   0x3   :  { %s20_s19 = sshll.u32 %s303_s18, 4  ;;  %s29_s21 = sshll.u32 %s304_s20, 4  ;;  %s21_s19 = int_to_ptr.vmem [resolvable:$true] %s20_s19  ;;  %s341_s21 = int_to_ptr.vmem [resolvable:$true] %s29_s21 }
   0x4   :  { %s231_s24 = scalar_lea.hbm %s393_s0, 128 }
   0x5   :  { %p232_p0 = scmp.ne.s32.totalorder %s393_s0, %s231_s24  ;;  %p235_p1 = scmp.lt.u32.totalorder %s231_s24, %s393_s0 }
   0x7   :  { %p237_p2 = pnand %p235_p1, %p232_p0 }
   0x9   :  { %240 = shalt.err (!%p237_p2)
}
   0xa   :  { %s241_s29 = scalar_lea.vmem %s21_s19, 128  ;;  %p246_p4 = scmp.lt.s32.totalorder %s21_s19, %s21_s19 }
   0xb   :  { %p242_p3 = scmp.ne.s32.totalorder %s21_s19, %s241_s29  ;;  %p247_p5 = scmp.lt.s32.totalorder %s241_s29, %s241_s29 }
   0xd   :  { %p248_p6 = por %p247_p5, %p246_p4 }
   0xf   :  { %p249_p7 = pnand %p248_p6, %p242_p3 }
  0x11   :  { %252 = shalt.err (!%p249_p7)
}
  0x12   :  { %23 = dma.hbm_to_vmem [thread:$0]  %s393_s0, 128, %s21_s19, [#allocation4]  }
  0x13   :  { %s253_s9 = scalar_lea.hbm %s394_s1, 512 }
  0x14   :  { %p254_p8 = scmp.ne.s32.totalorder %s394_s1, %s253_s9  ;;  %p257_p9 = scmp.lt.u32.totalorder %s253_s9, %s394_s1 }
  0x16   :  { %p259_p10 = pnand %p257_p9, %p254_p8 }
  0x18   :  { %262 = shalt.err (!%p259_p10)
}
  0x19   :  { %s263_s14 = scalar_lea.vmem %s341_s21, 512  ;;  %p268_p12 = scmp.lt.s32.totalorder %s341_s21, %s341_s21 }
  0x1a   :  { %p264_p11 = scmp.ne.s32.totalorder %s341_s21, %s263_s14  ;;  %p269_p13 = scmp.lt.s32.totalorder %s263_s14, %s263_s14 }
  0x1c   :  { %p270_p0 = por %p269_p13, %p268_p12 }
  0x1e   :  { %p271_p1 = pnand %p270_p0, %p264_p11 }
  0x20   :  { %274 = shalt.err (!%p271_p1)
}
  0x21   :  { %s305_s0 = smov 128   ;;  %s306_s15 = smov 8  }
  0x22   :  { %35 = dma.hbm_to_vmem [thread:$0]  %s394_s1, 512, %s341_s21, [#allocation7], %s305_s0, %s305_s0, %s306_s15  }
  0x23   :  { %297 = dma.done.wait [#allocation4], 128  }
  0x24   :  { %298 = vsyncadd [#allocation4], 4294967168 }
  0x25   :  { %299 = dma.done.wait [#allocation7], 512  }
  0x26   :  { %300 = vsyncadd [#allocation7], 4294966784  ;;  %v307_v0 = vmov 0.0|0.0   ;;  %vm308_vm0 = vmmov 0   ;;  %v309_v1 = vmov 0.0   ;;  %v49_v2 = vld [vmem:[#allocation6] sm:$0xff]  ;;  %v169_v30 = vlaneseq }
  0x27   :  { %213 = vmatprep.subr.bf16.mxu0 %v307_v0  ;;  %210 = vmatprep.mubr.msk.f32.mxu0 %vm308_vm0, %v309_v1  ;;  %v50_v3 = vld [vmem:[#allocation6 + $0x8] sm:$0xff]  ;;  %v51_v4 = vld [vmem:[#allocation6 + $0x10] sm:$0xff]  ;;  %v52_v6 = vld [vmem:[#allocation6 + $0x18] sm:$0xff]  ;;  %vm60_vm1 = vcmask 261120   ;;  %vm139_vm2 = vcmask 523264   ;;  %v166_v35 = vstv %s397_s4  ;;  %vm176_vm3 = vcmask 57344  }
  0x28   :  { %v214_v5 = vpack.c.bf16 %v50_v3, %v49_v2  ;;  %v217_v7 = vpack.c.bf16 %v52_v6, %v51_v4  ;;  %v48_v8 = vld [vmem:[#allocation3] sm:$0xff]  ;;  %v170_v31 = vand.u32 127, %v169_v30  ;;  %v172_v32 = vshrl.u32 %v169_v30, 7 }
  0x29   :  { %v194_v9 = vld [vmem:[%s395_s2] ss:$0 sm:$0xff] }
  0x2a   :  { %215 = vmatpush3.bf16.msra.mxu0 %v214_v5  ;;  %v196_v21 = vld [vmem:[%s396_s3] ss:$0 sm:$0xff]  ;;  %v173_v37 = vsub.s32 %v170_v31, %v172_v32  ;;  %s310_s3 = smov [#allocation8]  }
  0x2b   :  { %216 = vmatprep.subr.bf16.mxu0 %v307_v0  ;;  %s184_s22 = sshll.u32 %s310_s3, 4  ;;  %s185_s22 = int_to_ptr.vmem [resolvable:$true] %s184_s22 }
  0x2c   :  { %s275_s23 = scalar_lea.vmem %s185_s22, 16  ;;  %s279_s24 = scalar_lea.vmem %s185_s22, 32 }
  0x2d   :  { %p276_p2 = scmp.ne.s32.totalorder %s185_s22, %s275_s23  ;;  %p280_p3 = scmp.lt.s32.totalorder %s185_s22, %s185_s22 }
  0x2e   :  { %218 = vmatpush3.bf16.msra.mxu0 %v217_v7  ;;  %p281_p4 = scmp.lt.s32.totalorder %s279_s24, %s275_s23 }
  0x30   :  { %p282_p5 = por %p281_p4, %p280_p3 }
  0x31   :  { %211 = vmatmul.mubr.msk.f32.vlgmr.msra.gmra.mrb[0].mxu0 %vm60_vm1, %v48_v8 }
  0x32   :  { %p283_p6 = pnand %p282_p5, %p276_p2 }
 0x104   :  { %v130_v10 = vpop.f32.mrb[0].mxu0 }
 0x105   :  { %v131_v11 = vadd.f32 %v194_v9, %v130_v10  ;;  %v212_v12 = vpop.f32.mrb[1].mxu0 }
 0x107   :  { %v134_v13 = vmul.f32 0.70710677, %v131_v11 }
 0x109   :  { %227 = verf.f32 %v134_v13 }
 0x113   :  { %v228_v14 = vpop.eup %227 }
 0x114   :  { %v136_v15 = vadd.f32 1.0, %v228_v14 }
 0x116   :  { %v137_v16 = vmul.f32 0.5, %v136_v15 }
 0x118   :  { %v138_v17 = vmul.f32 %v137_v16, %v131_v11 }
 0x11a   :  { %v140_v18 = vsel %vm139_vm2, %v138_v17, 0.0 }
 0x11b   :  { %141 = vadd.xlane.f32.xlu0 %v140_v18 }
 0x1a8   :  { %v142_v19 = vpop.xlane.xlu0 %141 }
 0x1a9   :  { %v144_v20 = vmul.f32 0.015625, %v142_v19 }
 0x1ab   :  { %v145_v22 = vsub.f32 %v138_v17, %v144_v20 }
 0x1ad   :  { %v158_v23 = vmul.f32 %v196_v21, %v145_v22  ;;  %v146_v24 = vmul.f32 %v145_v22, %v145_v22 }
 0x1af   :  { %v159_v25 = vsel %vm139_vm2, %v158_v23, 0.0  ;;  %v147_v26 = vsel %vm139_vm2, %v146_v24, 0.0 }
 0x1b0   :  { %160 = vadd.xlane.f32.xlu1 %v159_v25  ;;  %148 = vadd.xlane.f32.xlu0 %v147_v26 }
 0x23d   :  { %v149_v27 = vpop.xlane.xlu0 %148  ;;  %v161_v34 = vpop.xlane.xlu1 %160 }
 0x23e   :  { %v150_v28 = vmul.f32 0.015625, %v149_v27 }
 0x240   :  { %v162_v29 = vadd.f32 1e-12, %v150_v28 }
 0x242   :  { %229 = vrsqrt.f32 %v162_v29 }
 0x24c   :  { %v230_v33 = vpop.eup %229 }
 0x24d   :  { %v164_v36 = vmul.f32 %v230_v33, %v161_v34 }
 0x24f   :  { %v167_v38 = vadd.f32 %v166_v35, %v164_v36 }
 0x251   :  { %v174_v39 = vrot.slane %v167_v38, %v173_v37 }
 0x253   :  { %177 = vst.msk [vmem:[#allocation8] sm:$0x1] %vm176_vm3, %v174_v39 }
 0x254   :  { %286 = shalt.err (!%p283_p6)
}
 0x255   :  { %s287_s4 = scalar_lea.hbm %s398_s5, 16 }
 0x256   :  { %p288_p7 = scmp.ne.s32.totalorder %s398_s5, %s287_s4  ;;  %p291_p8 = scmp.lt.u32.totalorder %s287_s4, %s398_s5 }
 0x258   :  { %p293_p9 = pnand %p291_p8, %p288_p7 }
 0x25a   :  { %296 = shalt.err (!%p293_p9)
}
 0x25b   :  { %187 = dma.vmem_to_hbm [thread:$0]  %s185_s22, 16, %s398_s5, [#allocation5]  }
 0x25c   :  { %301 = dma.done.wait [#allocation5], 16  }
 0x25d   :  { %302 = vsyncadd [#allocation5], 4294967280 }
 0x25e   :  { %191 = vsyncpa [#allocation4], 1 }
 0x25f   :  { %192 = vsyncpa [#allocation7], 1 }
 0x260   :  { %193 = vsyncpa [#allocation5], 1 }

</bundles_post_ra>
